<compile_context>
chip_gen: v7x
topology: tpu7x:2x2x1
jax: 0.10.0
libtpu: 0.0.40
codegen_flags: <defaults>
</compile_context>

<pallas_src>
import functools

import jax
import jax.numpy as jnp
from jax.experimental import pallas as pl
from jax.experimental.pallas import tpu as pltpu

BN_EPS = 1e-5

# Keep the resident-x scratch comfortably inside v7x's 64 MiB physical VMEM
# (32 MiB scoped default) while leaving room for double-buffered blocks.
_RESIDENT_X_BUDGET = 20 * 1024 * 1024
# Fold all batches into one block while the per-step x block stays tiny.
_BATCH_FOLD_BUDGET = 2 * 1024 * 1024


def _pick_time_tile(T):
    """Largest time tile <= 512 lanes that is a multiple of 128 and divides T."""
    if T <= 512:
        return T
    for cand in (512, 384, 256, 128):
        if T % cand == 0:
            return cand
    return T


def _film_kernel(C, inv_n, eps, resident, mm_dtype, nT,
                 x_ref, cond_ref, w_ref, bias_ref, out_ref, *scratch):
    """Fused Linear(adaptor) + BatchNorm1d(affine=False) + FiLM modulation.

    Grid: (phase, batch_block, time_tile).
      resident path (3 phases): mean pass (+ stash x in VMEM), centered-sumsq
        pass over the VMEM copy, then apply.  x touches HBM once.
      streaming path (2 phases): sum/sumsq pass, then apply (x read twice).
    """
    if resident:
        xres, acc_s, mean_s, rstd_s = scratch
    else:
        acc_s, sq_s, mean_s, rstd_s = scratch

    phase = pl.program_id(0)
    bi = pl.program_id(1)
    ti = pl.program_id(2)
    nb = pl.num_programs(1)
    nt = pl.num_programs(2)
    last_phase = pl.num_programs(0) - 1

    is_first = jnp.logical_and(bi == 0, ti == 0)
    is_last = jnp.logical_and(bi == nb - 1, ti == nt - 1)
    blk = bi * nT + ti                      # flat block id into the resident scratch

    # ----------------- phase 0: per-channel mean (and raw sumsq if streaming) ---
    @pl.when(phase == 0)
    def _stats0():
        @pl.when(is_first)
        def _init():
            acc_s[...] = jnp.zeros_like(acc_s)
            if not resident:
                sq_s[...] = jnp.zeros_like(sq_s)
            # The out block index is held constant during the stats phases; keep
            # the (unwritten) buffer zeroed so any flush is harmless.
            out_ref[...] = jnp.zeros_like(out_ref)

        xb = x_ref[...].astype(jnp.float32)            # (bB, C, tT)
        if resident:
            xres[blk] = xb                              # never re-read x from HBM
        acc_s[...] += jnp.sum(xb, axis=0)               # lane-wide partials (VPU only)
        if not resident:
            sq_s[...] += jnp.sum(xb * xb, axis=0)

        @pl.when(is_last)
        def _finalize0():
            mean = jnp.sum(acc_s[...], axis=1, keepdims=True) * inv_n
            mean_s[...] = mean
            if not resident:
                var = jnp.sum(sq_s[...], axis=1, keepdims=True) * inv_n - mean * mean
                rstd_s[...] = jax.lax.rsqrt(jnp.maximum(var, 0.0) + eps)

    # ----------------- phase 1 (resident only): centered sumsq from VMEM --------
    if resident:
        @pl.when(phase == 1)
        def _stats1():
            @pl.when(is_first)
            def _init():
                acc_s[...] = jnp.zeros_like(acc_s)

            d = xres[blk] - mean_s[...]                 # (bB, C, tT) - (C, 1)
            acc_s[...] += jnp.sum(d * d, axis=0)

            @pl.when(is_last)
            def _finalize1():
                var = jnp.sum(acc_s[...], axis=1, keepdims=True) * inv_n
                rstd_s[...] = jax.lax.rsqrt(var + eps)

    # ----------------- last phase: adaptor matmul + BN + FiLM -------------------
    @pl.when(phase == last_phase)
    def _apply():
        w = w_ref[...].astype(mm_dtype)                 # (2C, D), VMEM-resident
        bias = bias_ref[...].astype(jnp.float32)        # (2C, 1)
        if resident:
            xb = xres[blk]                              # (bB, C, tT) f32, from VMEM
        else:
            xb = x_ref[...].astype(jnp.float32)
        mean = mean_s[...]
        rstd = rstd_s[...]

        bB = out_ref.shape[0]
        for b in range(bB):                             # static, tiny unroll
            cond_b = cond_ref[b].astype(mm_dtype)       # (tT, D)
            # One K-minor MXU matmul -> gamma|beta already channel-major: (2C, tT)
            gb = jax.lax.dot_general(
                w, cond_b,
                dimension_numbers=(((1,), (1,)), ((), ())),
                preferred_element_type=jnp.float32) + bias
            g = gb[:C, :]                               # (C, tT)
            beta = gb[C:, :]                            # (C, tT)
            xhat = (xb[b] - mean) * rstd
            out_ref[b] = (xhat * g + beta).astype(out_ref.dtype)


def film_forward(x, cond, weight, bias, eps=BN_EPS):
    """FiLM.forward.  x: (B, C, T), cond: (B, T, D),
    weight: (2C, D) (torch Linear layout), bias: (2C,)."""
    B, C, T = x.shape
    Bc, Tc, D = cond.shape
    assert Bc == B and Tc == T, "cond must be (B, T, cond_dim) with T matching x"
    assert weight.shape == (2 * C, D) and bias.shape == (2 * C,)

    tT = _pick_time_tile(T)
    nT = T // tT
    resident = (B * C * T * 4) <= _RESIDENT_X_BUDGET
    bB = B if (B * C * tT * jnp.dtype(x.dtype).itemsize) <= _BATCH_FOLD_BUDGET else 1
    nB = B // bB                            # bB is B or 1 -> always divides
    num_phases = 3 if resident else 2
    last_p = num_phases - 1

    if resident:
        # Fetch x only in phase 0; afterwards hold the index at the last-fetched
        # block so the pipeline never re-DMAs x from HBM.
        def x_map(p, b, t):
            on0 = p == 0
            return (jnp.where(on0, b, nB - 1), 0, jnp.where(on0, t, nT - 1))
    else:
        def x_map(p, b, t):
            return (b, 0, t)

    def cond_map(p, b, t):
        on = p == last_p
        return (jnp.where(on, b, 0), jnp.where(on, t, 0), 0)

    def out_map(p, b, t):
        on = p == last_p
        return (jnp.where(on, b, 0), 0, jnp.where(on, t, 0))

    # bf16 MXU operands only if both inputs already arrive as bf16 (keeps the
    # ~1e-3 tolerance for f32 inputs); accumulation is always f32.
    mm_dtype = (jnp.bfloat16
                if (cond.dtype == jnp.bfloat16 and weight.dtype == jnp.bfloat16)
                else jnp.float32)

    scratch = []
    if resident:
        scratch.append(pltpu.VMEM((nB * nT, bB, C, tT), jnp.float32))  # resident x
        scratch.append(pltpu.VMEM((C, tT), jnp.float32))   # sum / centered-sumsq acc
    else:
        scratch.append(pltpu.VMEM((C, tT), jnp.float32))   # sum acc
        scratch.append(pltpu.VMEM((C, tT), jnp.float32))   # sumsq acc
    scratch += [pltpu.VMEM((C, 1), jnp.float32),           # mean
                pltpu.VMEM((C, 1), jnp.float32)]           # rstd

    # Explicit VMEM budget (resident scratch + double-buffered streamed blocks +
    # resident weights/bias + accumulators), kept v7x-safe (<= 64 MiB).
    isz = lambda a: jnp.dtype(a.dtype).itemsize
    est = ((nB * nT * bB * C * tT * 4 if resident else 0)
           + 2 * bB * C * tT * isz(x)              # x blocks (double-buffered)
           + 2 * bB * tT * D * isz(cond)           # cond blocks
           + 2 * bB * C * tT * isz(x)              # out blocks
           + 2 * C * D * isz(weight) + 2 * C * 4   # weight + bias
           + 3 * C * tT * 4)                       # accumulators / stats
    vmem_limit = int(min(64 * 1024 * 1024, max(32 * 1024 * 1024, 2 * est)))

    kernel = functools.partial(_film_kernel, C, 1.0 / float(B * T), float(eps),
                               resident, mm_dtype, nT)
    bias2 = bias.reshape(2 * C, 1)

    return pl.pallas_call(
        kernel,
        out_shape=jax.ShapeDtypeStruct((B, C, T), x.dtype),
        grid=(num_phases, nB, nT),
        in_specs=[
            pl.BlockSpec((bB, C, tT), x_map),
            pl.BlockSpec((bB, tT, D), cond_map),
            pl.BlockSpec((2 * C, D), lambda p, b, t: (0, 0)),   # resident weight
            pl.BlockSpec((2 * C, 1), lambda p, b, t: (0, 0)),   # resident bias
        ],
        out_specs=pl.BlockSpec((bB, C, tT), out_map),
        scratch_shapes=scratch,
        compiler_params=pltpu.CompilerParams(
            # phase carries the BN reduction; batch/time carry it inside the
            # stats phases -> all axes must be sequential.
            dimension_semantics=("arbitrary", "arbitrary", "arbitrary"),
            vmem_limit_bytes=vmem_limit),
    )(x, cond, weight, bias2)


def film_reference(x, cond, weight, bias, eps=BN_EPS):
    """Pure-JAX reference mirroring the PyTorch module (training-mode BN)."""
    gb = jnp.einsum('btd,od->bto', cond, weight) + bias        # (B, T, 2C)
    g, b = jnp.split(gb, 2, axis=-1)
    g = jnp.transpose(g, (0, 2, 1))                            # (B, C, T)
    b = jnp.transpose(b, (0, 2, 1))
    mean = jnp.mean(x, axis=(0, 2), keepdims=True)
    var = jnp.mean((x - mean) ** 2, axis=(0, 2), keepdims=True)
    xhat = (x - mean) / jnp.sqrt(var + eps)
    return xhat * g + b


if __name__ == "__main__":
    # Small shapes consistent with the module: batch=2, num_features=32,
    # cond_dim=32, seq=128 (multiple of 128 for lane-dense output stores).
    B, C, D, T = 2, 32, 32, 128

    key = jax.random.PRNGKey(0)
    kx, kc, kw, kb = jax.random.split(key, 4)
    x = jax.random.normal(kx, (B, C, T), dtype=jnp.float32)
    cond = jax.random.normal(kc, (B, T, D), dtype=jnp.float32)
    # torch.nn.Linear-style parameters (weight: (out_features, in_features)).
    bound = 1.0 / (D ** 0.5)
    weight = jax.random.uniform(kw, (2 * C, D), jnp.float32, -bound, bound)
    bias = jax.random.uniform(kb, (2 * C,), jnp.float32, -bound, bound)

    out = jax.jit(film_forward)(x, cond, weight, bias)
    out = jax.block_until_ready(out)

    ref = film_reference(x, cond, weight, bias)
    assert out.shape == (B, C, T)
    assert bool(jnp.isfinite(out).all())
    assert bool(jnp.allclose(out, ref, atol=1e-3, rtol=1e-3))
    print("KERNEL_OK")
</pallas_src>

<mosaic_0001>
module attributes {stable_mosaic.version = 11 : i64} {
  func.func @_film_kernel(%arg0: i32, %arg1: i32, %arg2: i32, %arg3: memref<2x32x128xf32, #tpu.memory_space<vmem>>, %arg4: memref<2x128x32xf32, #tpu.memory_space<vmem>>, %arg5: memref<64x32xf32, #tpu.memory_space<vmem>>, %arg6: memref<64x1xf32, #tpu.memory_space<vmem>>, %arg7: memref<2x32x128xf32, #tpu.memory_space<vmem>>, %arg8: memref<1x2x32x128xf32, #tpu.memory_space<vmem>>, %arg9: memref<32x128xf32, #tpu.memory_space<vmem>>, %arg10: memref<32x1xf32, #tpu.memory_space<vmem>>, %arg11: memref<32x1xf32, #tpu.memory_space<vmem>>) attributes {dimension_semantics = [#tpu.dimension_semantics<arbitrary>, #tpu.dimension_semantics<arbitrary>, #tpu.dimension_semantics<arbitrary>], iteration_bounds = array<i64: 3, 1, 1>, scalar_prefetch = 0 : i64, scratch_operands = 4 : i64, tpu.core_type = #tpu.core_type<tc>, window_params = [{transform_indices = @transform_0, window_bounds = array<i64: 2, 32, 128>}, {transform_indices = @transform_1, window_bounds = array<i64: 2, 128, 32>}, {pipeline_mode = #tpu.pipeline_mode<synchronous>, transform_indices = @transform_2, window_bounds = array<i64: 64, 32>}, {pipeline_mode = #tpu.pipeline_mode<synchronous>, transform_indices = @transform_3, window_bounds = array<i64: 64, 1>}, {transform_indices = @transform_4, window_bounds = array<i64: 2, 32, 128>}]} {
    %c0_i32 = arith.constant 0 : i32
    %0 = arith.cmpi eq, %arg1, %c0_i32 : i32
    %c0_i32_0 = arith.constant 0 : i32
    %1 = arith.cmpi eq, %arg2, %c0_i32_0 : i32
    %2 = arith.andi %0, %1 : i1
    %c0_i32_1 = arith.constant 0 : i32
    %3 = arith.cmpi eq, %arg1, %c0_i32_1 : i32
    %c0_i32_2 = arith.constant 0 : i32
    %4 = arith.cmpi eq, %arg2, %c0_i32_2 : i32
    %5 = arith.andi %3, %4 : i1
    %c1_i32 = arith.constant 1 : i32
    %6 = arith.muli %arg1, %c1_i32 : i32
    %7 = arith.addi %6, %arg2 : i32
    %c0_i32_3 = arith.constant 0 : i32
    %8 = arith.cmpi eq, %arg0, %c0_i32_3 : i32
    %9 = arith.extui %8 : i1 to i32
    %c0_i32_4 = arith.constant 0 : i32
    %10 = arith.cmpi ne, %9, %c0_i32_4 : i32
    scf.if %10 {
      %17 = arith.extui %2 : i1 to i32
      %c0_i32_8 = arith.constant 0 : i32
      %18 = arith.cmpi ne, %17, %c0_i32_8 : i32
      scf.if %18 {
        %cst_19 = arith.constant 0.000000e+00 : f32
        %30 = vector.broadcast %cst_19 : f32 to vector<32x128xf32>
        %c0_20 = arith.constant 0 : index
        %c0_21 = arith.constant 0 : index
        %31 = vector.load %arg9[%c0_20, %c0_21] : memref<32x128xf32, #tpu.memory_space<vmem>>, vector<32x128xf32>
        tpu.vector_store %arg9[%c0_20, %c0_21], %30 {strides = array<i32>} : memref<32x128xf32, #tpu.memory_space<vmem>>, vector<32x128xf32>,
        %cst_22 = arith.constant 0.000000e+00 : f32
        %32 = vector.broadcast %cst_22 : f32 to vector<2x32x128xf32>
        %c0_23 = arith.constant 0 : index
        %c0_24 = arith.constant 0 : index
        %c0_25 = arith.constant 0 : index
        %33 = vector.load %arg7[%c0_23, %c0_24, %c0_25] : memref<2x32x128xf32, #tpu.memory_space<vmem>>, vector<2x32x128xf32>
        tpu.vector_store %arg7[%c0_23, %c0_24, %c0_25], %32 {strides = array<i32>} : memref<2x32x128xf32, #tpu.memory_space<vmem>>, vector<2x32x128xf32>,
      } else {
      }
      %c0 = arith.constant 0 : index
      %c0_9 = arith.constant 0 : index
      %c0_10 = arith.constant 0 : index
      %19 = vector.load %arg3[%c0, %c0_9, %c0_10] : memref<2x32x128xf32, #tpu.memory_space<vmem>>, vector<2x32x128xf32>
      %20 = arith.index_cast %7 : i32 to index
      %c0_11 = arith.constant 0 : index
      %c0_12 = arith.constant 0 : index
      %c0_13 = arith.constant 0 : index
      %21 = vector.load %arg8[%20, %c0_11, %c0_12, %c0_13] : memref<1x2x32x128xf32, #tpu.memory_space<vmem>>, vector<1x2x32x128xf32>
      %22 = vector.shape_cast %21 : vector<1x2x32x128xf32> to vector<2x32x128xf32>
      %23 = vector.shape_cast %19 : vector<2x32x128xf32> to vector<1x2x32x128xf32>
      tpu.vector_store %arg8[%20, %c0_11, %c0_12, %c0_13], %23 {strides = array<i32>} : memref<1x2x32x128xf32, #tpu.memory_space<vmem>>, vector<1x2x32x128xf32>,
      %c0_14 = arith.constant 0 : index
      %c0_15 = arith.constant 0 : index
      %24 = vector.load %arg9[%c0_14, %c0_15] : memref<32x128xf32, #tpu.memory_space<vmem>>, vector<32x128xf32>
      %cst = arith.constant dense<0.000000e+00> : vector<32x128xf32>
      %25 = vector.multi_reduction <add>, %19, %cst [0] : vector<2x32x128xf32> to vector<32x128xf32>
      %26 = arith.addf %24, %25 : vector<32x128xf32>
      %c0_16 = arith.constant 0 : index
      %c0_17 = arith.constant 0 : index
      %27 = vector.load %arg9[%c0_16, %c0_17] : memref<32x128xf32, #tpu.memory_space<vmem>>, vector<32x128xf32>
      tpu.vector_store %arg9[%c0_16, %c0_17], %26 {strides = array<i32>} : memref<32x128xf32, #tpu.memory_space<vmem>>, vector<32x128xf32>,
      %28 = arith.extui %5 : i1 to i32
      %c0_i32_18 = arith.constant 0 : i32
      %29 = arith.cmpi ne, %28, %c0_i32_18 : i32
      scf.if %29 {
        %c0_19 = arith.constant 0 : index
        %c0_20 = arith.constant 0 : index
        %30 = vector.load %arg9[%c0_19, %c0_20] : memref<32x128xf32, #tpu.memory_space<vmem>>, vector<32x128xf32>
        %cst_21 = arith.constant dense<0.000000e+00> : vector<32xf32>
        %31 = vector.multi_reduction <add>, %30, %cst_21 [1] : vector<32x128xf32> to vector<32xf32>
        %32 = vector.shape_cast %31 : vector<32xf32> to vector<32x1xf32>
        %cst_22 = arith.constant 3.906250e-03 : f32
        %33 = vector.broadcast %cst_22 : f32 to vector<32x1xf32>
        %34 = arith.mulf %32, %33 : vector<32x1xf32>
        %c0_23 = arith.constant 0 : index
        %c0_24 = arith.constant 0 : index
        %35 = vector.load %arg10[%c0_23, %c0_24] : memref<32x1xf32, #tpu.memory_space<vmem>>, vector<32x1xf32>
        tpu.vector_store %arg10[%c0_23, %c0_24], %34 {strides = array<i32>} : memref<32x1xf32, #tpu.memory_space<vmem>>, vector<32x1xf32>,
      } else {
      }
    } else {
    }
    %c1_i32_5 = arith.constant 1 : i32
    %11 = arith.cmpi eq, %arg0, %c1_i32_5 : i32
    %12 = arith.extui %11 : i1 to i32
    %c0_i32_6 = arith.constant 0 : i32
    %13 = arith.cmpi ne, %12, %c0_i32_6 : i32
    scf.if %13 {
      %17 = arith.extui %2 : i1 to i32
      %c0_i32_8 = arith.constant 0 : i32
      %18 = arith.cmpi ne, %17, %c0_i32_8 : i32
      scf.if %18 {
        %cst_18 = arith.constant 0.000000e+00 : f32
        %33 = vector.broadcast %cst_18 : f32 to vector<32x128xf32>
        %c0_19 = arith.constant 0 : index
        %c0_20 = arith.constant 0 : index
        %34 = vector.load %arg9[%c0_19, %c0_20] : memref<32x128xf32, #tpu.memory_space<vmem>>, vector<32x128xf32>
        tpu.vector_store %arg9[%c0_19, %c0_20], %33 {strides = array<i32>} : memref<32x128xf32, #tpu.memory_space<vmem>>, vector<32x128xf32>,
      } else {
      }
      %19 = arith.index_cast %7 : i32 to index
      %c0 = arith.constant 0 : index
      %c0_9 = arith.constant 0 : index
      %c0_10 = arith.constant 0 : index
      %20 = vector.load %arg8[%19, %c0, %c0_9, %c0_10] : memref<1x2x32x128xf32, #tpu.memory_space<vmem>>, vector<1x2x32x128xf32>
      %21 = vector.shape_cast %20 : vector<1x2x32x128xf32> to vector<2x32x128xf32>
      %c0_11 = arith.constant 0 : index
      %c0_12 = arith.constant 0 : index
      %22 = vector.load %arg10[%c0_11, %c0_12] : memref<32x1xf32, #tpu.memory_space<vmem>>, vector<32x1xf32>
      %23 = vector.shape_cast %22 : vector<32x1xf32> to vector<1x32x1xf32>
      %24 = vector.broadcast %23 : vector<1x32x1xf32> to vector<2x32x128xf32>
      %25 = arith.subf %21, %24 : vector<2x32x128xf32>
      %c0_13 = arith.constant 0 : index
      %c0_14 = arith.constant 0 : index
      %26 = vector.load %arg9[%c0_13, %c0_14] : memref<32x128xf32, #tpu.memory_space<vmem>>, vector<32x128xf32>
      %27 = arith.mulf %25, %25 : vector<2x32x128xf32>
      %cst = arith.constant dense<0.000000e+00> : vector<32x128xf32>
      %28 = vector.multi_reduction <add>, %27, %cst [0] : vector<2x32x128xf32> to vector<32x128xf32>
      %29 = arith.addf %26, %28 : vector<32x128xf32>
      %c0_15 = arith.constant 0 : index
      %c0_16 = arith.constant 0 : index
      %30 = vector.load %arg9[%c0_15, %c0_16] : memref<32x128xf32, #tpu.memory_space<vmem>>, vector<32x128xf32>
      tpu.vector_store %arg9[%c0_15, %c0_16], %29 {strides = array<i32>} : memref<32x128xf32, #tpu.memory_space<vmem>>, vector<32x128xf32>,
      %31 = arith.extui %5 : i1 to i32
      %c0_i32_17 = arith.constant 0 : i32
      %32 = arith.cmpi ne, %31, %c0_i32_17 : i32
      scf.if %32 {
        %c0_18 = arith.constant 0 : index
        %c0_19 = arith.constant 0 : index
        %33 = vector.load %arg9[%c0_18, %c0_19] : memref<32x128xf32, #tpu.memory_space<vmem>>, vector<32x128xf32>
        %cst_20 = arith.constant dense<0.000000e+00> : vector<32xf32>
        %34 = vector.multi_reduction <add>, %33, %cst_20 [1] : vector<32x128xf32> to vector<32xf32>
        %35 = vector.shape_cast %34 : vector<32xf32> to vector<32x1xf32>
        %cst_21 = arith.constant 3.906250e-03 : f32
        %36 = vector.broadcast %cst_21 : f32 to vector<32x1xf32>
        %37 = arith.mulf %35, %36 : vector<32x1xf32>
        %cst_22 = arith.constant 9.99999974E-6 : f32
        %38 = vector.broadcast %cst_22 : f32 to vector<32x1xf32>
        %39 = arith.addf %37, %38 : vector<32x1xf32>
        %40 = math.rsqrt %39 : vector<32x1xf32>
        %c0_23 = arith.constant 0 : index
        %c0_24 = arith.constant 0 : index
        %41 = vector.load %arg11[%c0_23, %c0_24] : memref<32x1xf32, #tpu.memory_space<vmem>>, vector<32x1xf32>
        tpu.vector_store %arg11[%c0_23, %c0_24], %40 {strides = array<i32>} : memref<32x1xf32, #tpu.memory_space<vmem>>, vector<32x1xf32>,
      } else {
      }
    } else {
    }
    %c2_i32 = arith.constant 2 : i32
    %14 = arith.cmpi eq, %arg0, %c2_i32 : i32
    %15 = arith.extui %14 : i1 to i32
    %c0_i32_7 = arith.constant 0 : i32
    %16 = arith.cmpi ne, %15, %c0_i32_7 : i32
    scf.if %16 {
      %c0 = arith.constant 0 : index
      %c0_8 = arith.constant 0 : index
      %17 = vector.load %arg5[%c0, %c0_8] : memref<64x32xf32, #tpu.memory_space<vmem>>, vector<64x32xf32>
      %c0_9 = arith.constant 0 : index
      %c0_10 = arith.constant 0 : index
      %18 = vector.load %arg6[%c0_9, %c0_10] : memref<64x1xf32, #tpu.memory_space<vmem>>, vector<64x1xf32>
      %19 = arith.index_cast %7 : i32 to index
      %c0_11 = arith.constant 0 : index
      %c0_12 = arith.constant 0 : index
      %c0_13 = arith.constant 0 : index
      %20 = vector.load %arg8[%19, %c0_11, %c0_12, %c0_13] : memref<1x2x32x128xf32, #tpu.memory_space<vmem>>, vector<1x2x32x128xf32>
      %21 = vector.shape_cast %20 : vector<1x2x32x128xf32> to vector<2x32x128xf32>
      %c0_14 = arith.constant 0 : index
      %c0_15 = arith.constant 0 : index
      %22 = vector.load %arg10[%c0_14, %c0_15] : memref<32x1xf32, #tpu.memory_space<vmem>>, vector<32x1xf32>
      %c0_16 = arith.constant 0 : index
      %c0_17 = arith.constant 0 : index
      %23 = vector.load %arg11[%c0_16, %c0_17] : memref<32x1xf32, #tpu.memory_space<vmem>>, vector<32x1xf32>
      %c0_18 = arith.constant 0 : index
      %c0_19 = arith.constant 0 : index
      %c0_20 = arith.constant 0 : index
      %24 = vector.load %arg4[%c0_18, %c0_19, %c0_20] : memref<2x128x32xf32, #tpu.memory_space<vmem>>, vector<1x128x32xf32>
      %25 = vector.shape_cast %24 : vector<1x128x32xf32> to vector<128x32xf32>
      %cst = arith.constant dense<0.000000e+00> : vector<64x128xf32>
      %26 = tpu.matmul %17, %25, %cst {dimension_numbers = #tpu.dot_dimension_numbers<[1], [1], [0], [0], [0, 0, 1, 0], [], []>} : vector<64x32xf32>, vector<128x32xf32>, vector<64x128xf32> -> vector<64x128xf32>
      %27 = vector.broadcast %18 : vector<64x1xf32> to vector<64x128xf32>
      %28 = arith.addf %26, %27 : vector<64x128xf32>
      %29 = vector.extract_strided_slice %28 {offsets = [0, 0], sizes = [32, 128], strides = [1, 1]} : vector<64x128xf32> to vector<32x128xf32>
      %30 = vector.extract_strided_slice %28 {offsets = [32, 0], sizes = [32, 128], strides = [1, 1]} : vector<64x128xf32> to vector<32x128xf32>
      %31 = vector.extract_strided_slice %21 {offsets = [0, 0, 0], sizes = [1, 32, 128], strides = [1, 1, 1]} : vector<2x32x128xf32> to vector<1x32x128xf32>
      %32 = vector.shape_cast %31 : vector<1x32x128xf32> to vector<32x128xf32>
      %33 = vector.broadcast %22 : vector<32x1xf32> to vector<32x128xf32>
      %34 = arith.subf %32, %33 : vector<32x128xf32>
      %35 = vector.broadcast %23 : vector<32x1xf32> to vector<32x128xf32>
      %36 = arith.mulf %34, %35 : vector<32x128xf32>
      %37 = arith.mulf %36, %29 : vector<32x128xf32>
      %38 = arith.addf %37, %30 : vector<32x128xf32>
      %c0_21 = arith.constant 0 : index
      %c0_22 = arith.constant 0 : index
      %c0_23 = arith.constant 0 : index
      %39 = vector.load %arg7[%c0_21, %c0_22, %c0_23] : memref<2x32x128xf32, #tpu.memory_space<vmem>>, vector<1x32x128xf32>
      %40 = vector.shape_cast %39 : vector<1x32x128xf32> to vector<32x128xf32>
      %41 = vector.shape_cast %38 : vector<32x128xf32> to vector<1x32x128xf32>
      tpu.vector_store %arg7[%c0_21, %c0_22, %c0_23], %41 {strides = array<i32>} : memref<2x32x128xf32, #tpu.memory_space<vmem>>, vector<1x32x128xf32>,
      %c1 = arith.constant 1 : index
      %c0_24 = arith.constant 0 : index
      %c0_25 = arith.constant 0 : index
      %42 = vector.load %arg4[%c1, %c0_24, %c0_25] : memref<2x128x32xf32, #tpu.memory_space<vmem>>, vector<1x128x32xf32>
      %43 = vector.shape_cast %42 : vector<1x128x32xf32> to vector<128x32xf32>
      %cst_26 = arith.constant dense<0.000000e+00> : vector<64x128xf32>
      %44 = tpu.matmul %17, %43, %cst_26 {dimension_numbers = #tpu.dot_dimension_numbers<[1], [1], [0], [0], [0, 0, 1, 0], [], []>} : vector<64x32xf32>, vector<128x32xf32>, vector<64x128xf32> -> vector<64x128xf32>
      %45 = vector.broadcast %18 : vector<64x1xf32> to vector<64x128xf32>
      %46 = arith.addf %44, %45 : vector<64x128xf32>
      %47 = vector.extract_strided_slice %46 {offsets = [0, 0], sizes = [32, 128], strides = [1, 1]} : vector<64x128xf32> to vector<32x128xf32>
      %48 = vector.extract_strided_slice %46 {offsets = [32, 0], sizes = [32, 128], strides = [1, 1]} : vector<64x128xf32> to vector<32x128xf32>
      %49 = vector.extract_strided_slice %21 {offsets = [1, 0, 0], sizes = [1, 32, 128], strides = [1, 1, 1]} : vector<2x32x128xf32> to vector<1x32x128xf32>
      %50 = vector.shape_cast %49 : vector<1x32x128xf32> to vector<32x128xf32>
      %51 = vector.broadcast %22 : vector<32x1xf32> to vector<32x128xf32>
      %52 = arith.subf %50, %51 : vector<32x128xf32>
      %53 = vector.broadcast %23 : vector<32x1xf32> to vector<32x128xf32>
      %54 = arith.mulf %52, %53 : vector<32x128xf32>
      %55 = arith.mulf %54, %47 : vector<32x128xf32>
      %56 = arith.addf %55, %48 : vector<32x128xf32>
      %c1_27 = arith.constant 1 : index
      %c0_28 = arith.constant 0 : index
      %c0_29 = arith.constant 0 : index
      %57 = vector.load %arg7[%c1_27, %c0_28, %c0_29] : memref<2x32x128xf32, #tpu.memory_space<vmem>>, vector<1x32x128xf32>
      %58 = vector.shape_cast %57 : vector<1x32x128xf32> to vector<32x128xf32>
      %59 = vector.shape_cast %56 : vector<32x128xf32> to vector<1x32x128xf32>
      tpu.vector_store %arg7[%c1_27, %c0_28, %c0_29], %59 {strides = array<i32>} : memref<2x32x128xf32, #tpu.memory_space<vmem>>, vector<1x32x128xf32>,
    } else {
    }
    return
  }
  func.func @transform_0(%arg0: i32, %arg1: i32, %arg2: i32) -> (i32, i32, i32) {
    %c0_i32 = arith.constant 0 : i32
    %0 = arith.cmpi eq, %arg0, %c0_i32 : i32
    %c0_i32_0 = arith.constant 0 : i32
    %1 = arith.select %0, %arg1, %c0_i32_0 : i32
    %c0_i32_1 = arith.constant 0 : i32
    %2 = arith.select %0, %arg2, %c0_i32_1 : i32
    %c0_i32_2 = arith.constant 0 : i32
    %c0_i32_3 = arith.constant 0 : i32
    return %1, %c0_i32_2, %2 : i32, i32, i32
  }
  func.func @transform_1(%arg0: i32, %arg1: i32, %arg2: i32) -> (i32, i32, i32) {
    %c2_i32 = arith.constant 2 : i32
    %0 = arith.cmpi eq, %arg0, %c2_i32 : i32
    %c0_i32 = arith.constant 0 : i32
    %1 = arith.select %0, %arg1, %c0_i32 : i32
    %c0_i32_0 = arith.constant 0 : i32
    %2 = arith.select %0, %arg2, %c0_i32_0 : i32
    %c0_i32_1 = arith.constant 0 : i32
    %c0_i32_2 = arith.constant 0 : i32
    return %1, %2, %c0_i32_1 : i32, i32, i32
  }
  func.func @transform_2(%arg0: i32, %arg1: i32, %arg2: i32) -> (i32, i32) {
    %c0_i32 = arith.constant 0 : i32
    %c0_i32_0 = arith.constant 0 : i32
    %c0_i32_1 = arith.constant 0 : i32
    return %c0_i32, %c0_i32_0 : i32, i32
  }
  func.func @transform_3(%arg0: i32, %arg1: i32, %arg2: i32) -> (i32, i32) {
    %c0_i32 = arith.constant 0 : i32
    %c0_i32_0 = arith.constant 0 : i32
    %c0_i32_1 = arith.constant 0 : i32
    return %c0_i32, %c0_i32_0 : i32, i32
  }
  func.func @transform_4(%arg0: i32, %arg1: i32, %arg2: i32) -> (i32, i32, i32) {
    %c2_i32 = arith.constant 2 : i32
    %0 = arith.cmpi eq, %arg0, %c2_i32 : i32
    %c0_i32 = arith.constant 0 : i32
    %1 = arith.select %0, %arg1, %c0_i32 : i32
    %c0_i32_0 = arith.constant 0 : i32
    %2 = arith.select %0, %arg2, %c0_i32_0 : i32
    %c0_i32_1 = arith.constant 0 : i32
    %c0_i32_2 = arith.constant 0 : i32
    return %1, %c0_i32_1, %2 : i32, i32, i32
  }
}

</mosaic_0001>

<bundles_post_ra>
// kernel: film_forward.1
= control target key start
LH: loop header
LB: loop body
LE: loop exit
PB: predicated region body
PF: predicated region fallthrough
CT: control target
= control target key end

     0   :  { %9 = vsyncpa [#allocation7], 0  ;;  %s1939_s0 = inlined_call_operand.vmem [shape: f32[2,32,128], index: 0, kind: input, shape index: {}]   ;;  %s1940_s1 = inlined_call_operand.vmem [shape: f32[2,128,32], index: 1, kind: input, shape index: {}]   ;;  %s1941_s2 = inlined_call_operand.vmem [shape: f32[64,32], index: 2, kind: input, shape index: {}]   ;;  %s1942_s3 = inlined_call_operand.vmem [shape: f32[64,1], index: 3, kind: input, shape index: {}]   ;;  %s1943_s4 = inlined_call_operand.hbm [shape: f32[2,32,128], index: 4, kind: output, shape index: {}]  }
   0x1   :  { %11 = vsyncpa [#allocation7 + $0x1], 0  ;;  %s1616_s15 = smov 0   ;;  %s1618_s16 = smov 0  }
   0x2   :  { %s1620_s17 = smov 0  }
   0x3 LB: > { %s1163_s18 = sadd.s32 4294967295, %s1583_s17   ;;  %s1164_s19 = sadd.s32 4294967294, %s1583_s17   ;;  %s1583_s17 = sphi %s1620_s17, %s17_s17   ;;  %s1579_s16 = sphi %s1618_s16, %s1948_s16   ;;  %s1575_s15 = sphi %s1616_s15, %s1947_s15  }
   0x4   : > { %s36_s20 = sadd.s32 1, %s1579_s16  ;;  %p1169_p0 = scmp.ge.s32.totalorder %s1583_s17, 1 }
   0x5   : > { %p38_p1 = scmp.ge.s32.totalorder %s36_s20, 3  ;;  %p242_p2 = scmp.lt.s32.totalorder %s1583_s17, 4 }
   0x7   : > { %s1950_s20 = smov (%p38_p1, %s36_s20), 0  ;;  %p243_p3 = pnand %p1169_p0, %p242_p2 }
   0x8   : > { %p1170_p4 = scmp.ne.s32.totalorder (!%p243_p3), %s1575_s15, 0 }
   0x9   : > { %246 = sbr.rel (%p243_p3) target bundleno = 795 (0x31b), region = 36 }
  0x10   : > { %334 = sbr.rel (%p1170_p4) target bundleno = 169 (0xa9), region = 40  ;;  %v351_v0 = vld [vmem:[%s1939_s0 + $0x10] sm:$0xff] (!%p1170_p4)  ;;  %v349_v2 = vld [vmem:[%s1939_s0] sm:$0xff] (!%p1170_p4)  ;;  %v1585_v3 = vmov (!%p1170_p4), 0.0   ;;  %v352_v6 = vld [vmem:[%s1939_s0 + $0x18] sm:$0xff] (!%p1170_p4)  ;;  %vm401_vm0 = vcmask (!%p1170_p4), 7168  }
  0x11   : > { %v355_v1 = vld [vmem:[%s1939_s0 + $0x30] sm:$0xff] (!%p1170_p4)  ;;  %341 = vst [vmem:[#allocation6] sm:$0xff] (!%p1170_p4), %v1585_v3  ;;  %342 = vst [vmem:[#allocation6 + $0x8] sm:$0xff] (!%p1170_p4), %v1585_v3  ;;  %v353_v5 = vld [vmem:[%s1939_s0 + $0x20] sm:$0xff] (!%p1170_p4) }
  0x12   : > { %343 = vst [vmem:[#allocation6 + $0x10] sm:$0xff] (!%p1170_p4), %v1585_v3  ;;  %344 = vst [vmem:[#allocation6 + $0x18] sm:$0xff] (!%p1170_p4), %v1585_v3  ;;  %v373_v4 = vadd.f32 (!%p1170_p4), %v355_v1, %v351_v0  ;;  %v356_v7 = vld [vmem:[%s1939_s0 + $0x38] sm:$0xff] (!%p1170_p4)  ;;  %v371_v8 = vadd.f32 (!%p1170_p4), %v353_v5, %v349_v2  ;;  %v350_v10 = vld [vmem:[%s1939_s0 + $0x8] sm:$0xff] (!%p1170_p4) }
  0x13   : > { %345 = vst [vmem:[#allocation6 + $0x20] sm:$0xff] (!%p1170_p4), %v1585_v3  ;;  %346 = vst [vmem:[#allocation6 + $0x28] sm:$0xff] (!%p1170_p4), %v1585_v3  ;;  %v374_v9 = vadd.f32 (!%p1170_p4), %v356_v7, %v352_v6  ;;  %v354_v11 = vld [vmem:[%s1939_s0 + $0x28] sm:$0xff] (!%p1170_p4) }
  0x14   : > { %347 = vst [vmem:[#allocation6 + $0x30] sm:$0xff] (!%p1170_p4), %v1585_v3  ;;  %348 = vst [vmem:[#allocation6 + $0x38] sm:$0xff] (!%p1170_p4), %v1585_v3  ;;  %v372_v12 = vadd.f32 (!%p1170_p4), %v354_v11, %v350_v10  ;;  %393 = vadd.xlane.f32.xlu1 (!%p1170_p4), %v373_v4  ;;  %389 = vadd.xlane.f32.xlu0 (!%p1170_p4), %v371_v8 }
  0x15   : > { %361 = vst [vmem:[#allocation2 + $0x10] sm:$0xff] (!%p1170_p4), %v351_v0  ;;  %365 = vst [vmem:[#allocation2 + $0x30] sm:$0xff] (!%p1170_p4), %v355_v1 }
  0x16   : > { %359 = vst [vmem:[#allocation2] sm:$0xff] (!%p1170_p4), %v349_v2  ;;  %363 = vst [vmem:[#allocation2 + $0x20] sm:$0xff] (!%p1170_p4), %v353_v5 }
  0x17   : > { %362 = vst [vmem:[#allocation2 + $0x18] sm:$0xff] %v352_v6  ;;  %366 = vst [vmem:[#allocation2 + $0x38] sm:$0xff] %v356_v7 }
  0x18   : > { %360 = vst [vmem:[#allocation2 + $0x8] sm:$0xff] %v350_v10  ;;  %364 = vst [vmem:[#allocation2 + $0x28] sm:$0xff] %v354_v11  ;;  %395 = vadd.xlane.f32.xlu1 %v374_v9  ;;  %391 = vadd.xlane.f32.xlu0 %v372_v12 }
  0xa1   : > { %v394_v13 = vpop.xlane.xlu1 %393  ;;  %v390_v15 = vpop.xlane.xlu0 %389 }
  0xa2   : > { %v399_v14 = vmul.f32 0.00390625, %v394_v13  ;;  %v397_v16 = vmul.f32 0.00390625, %v390_v15 }
  0xa4   : > { %404 = vst.msk [vmem:[#allocation4 + $0x10] sm:$0xff] %vm401_vm0, %v399_v14  ;;  %402 = vst.msk [vmem:[#allocation4] sm:$0xff] %vm401_vm0, %v397_v16 }
  0xa5   : > { %v396_v17 = vpop.xlane.xlu1 %395  ;;  %v392_v19 = vpop.xlane.xlu0 %391 }
  0xa6   : > { %v400_v18 = vmul.f32 0.00390625, %v396_v17  ;;  %v398_v20 = vmul.f32 0.00390625, %v392_v19 }
  0xa8   : > { %405 = vst.msk [vmem:[#allocation4 + $0x18] sm:$0xff] %vm401_vm0, %v400_v18  ;;  %403 = vst.msk [vmem:[#allocation4 + $0x8] sm:$0xff] %vm401_vm0, %v398_v20 }
  0xa9 PF: > { %p1171_p5 = scmp.ne.s32.totalorder %s1575_s15, 1 }
  0xaa   : > { %v1586_v23 = vmov (!%p1171_p5), 0   ;;  %v419_v42 = vld [vmem:[#allocation2 + $0x8] sm:$0xff] (!%p1171_p5)  ;;  %vm508_vm1 = vcmask (!%p1171_p5), 7168  }
  0xab   : > { %409 = sbr.rel (%p1171_p5) target bundleno = 472 (0x1d8), region = 52  ;;  %v428_v21 = vld [vmem:[#allocation4 + $0x10] sm:$0xff] (!%p1171_p5)  ;;  %v426_v22 = vld [vmem:[#allocation4] sm:$0xff] (!%p1171_p5)  ;;  %1520 = vset.pattern.permute.xlu1 (!%p1171_p5), %v1586_v23  ;;  %1519 = vset.pattern.permute.xlu0 (!%p1171_p5), %v1586_v23  ;;  %v423_v43 = vld [vmem:[#allocation2 + $0x28] sm:$0xff] (!%p1171_p5) }
  0xac   : > { %442 = vperm.xlu1 (!%p1171_p5), %1520, %v428_v21   ;;  %432 = vperm.xlu0 (!%p1171_p5), %1519, %v426_v22  }
  0xae   : > { %v420_v26 = vld [vmem:[#allocation2 + $0x10] sm:$0xff] (!%p1171_p5) }
  0xaf   : > { %v429_v24 = vld [vmem:[#allocation4 + $0x18] sm:$0xff] (!%p1171_p5)  ;;  %v427_v25 = vld [vmem:[#allocation4 + $0x8] sm:$0xff] (!%p1171_p5)  ;;  %v424_v27 = vld [vmem:[#allocation2 + $0x30] sm:$0xff] (!%p1171_p5) }
  0xb0   : > { %447 = vperm.xlu1 (!%p1171_p5), %1520, %v429_v24   ;;  %437 = vperm.xlu0 (!%p1171_p5), %1519, %v427_v25   ;;  %v418_v28 = vld [vmem:[#allocation2] sm:$0xff] (!%p1171_p5)  ;;  %v421_v36 = vld [vmem:[#allocation2 + $0x18] sm:$0xff] (!%p1171_p5) }
  0xb1   : > { %v422_v29 = vld [vmem:[#allocation2 + $0x20] sm:$0xff] (!%p1171_p5)  ;;  %v425_v37 = vld [vmem:[#allocation2 + $0x38] sm:$0xff] (!%p1171_p5) }
 0x12b   : > { %v443_v30 = vpop.permute.xlu1 %442  ;;  %v433_v31 = vpop.permute.xlu0 %432 }
 0x12c   : > { %v452_v32 = vsub.f32 %v420_v26, %v443_v30  ;;  %v456_v33 = vsub.f32 %v424_v27, %v443_v30  ;;  %v450_v34 = vsub.f32 %v418_v28, %v433_v31  ;;  %v454_v35 = vsub.f32 %v422_v29, %v433_v31 }
 0x12e   : > { %v464_v38 = vmul.f32 %v452_v32, %v452_v32  ;;  %v468_v39 = vmul.f32 %v456_v33, %v456_v33  ;;  %v462_v40 = vmul.f32 %v450_v34, %v450_v34  ;;  %v466_v41 = vmul.f32 %v454_v35, %v454_v35 }
 0x12f   : > { %v448_v44 = vpop.permute.xlu1 %447  ;;  %v438_v45 = vpop.permute.xlu0 %437 }
 0x130   : > { %v472_v46 = vadd.f32 %v468_v39, %v464_v38  ;;  %v470_v47 = vadd.f32 %v466_v41, %v462_v40  ;;  %v453_v48 = vsub.f32 %v421_v36, %v448_v44  ;;  %v457_v49 = vsub.f32 %v425_v37, %v448_v44 }
 0x131   : > { %v451_v50 = vsub.f32 %v419_v42, %v438_v45  ;;  %v455_v51 = vsub.f32 %v423_v43, %v438_v45 }
 0x132   : > { %v465_v52 = vmul.f32 %v453_v48, %v453_v48  ;;  %v469_v53 = vmul.f32 %v457_v49, %v457_v49  ;;  %488 = vadd.xlane.f32.xlu0 %v470_v47 }
 0x133   : > { %v463_v54 = vmul.f32 %v451_v50, %v451_v50  ;;  %v467_v55 = vmul.f32 %v455_v51, %v455_v51 }
 0x134   : > { %v473_v56 = vadd.f32 %v469_v53, %v465_v52 }
 0x135   : > { %v471_v57 = vadd.f32 %v467_v55, %v463_v54 }
 0x136   : > { %492 = vadd.xlane.f32.xlu0 %v472_v46 }
 0x137   : > { %490 = vadd.xlane.f32.xlu1 %v471_v57 }
 0x13a   : > { %494 = vadd.xlane.f32.xlu0 %v473_v56 }
 0x1bf   : > { %v489_v58 = vpop.xlane.xlu0 %488 }
 0x1c0   : > { %v496_v59 = vmul.f32 0.00390625, %v489_v58 }
 0x1c2   : > { %v500_v60 = vadd.f32 1e-05, %v496_v59 }
 0x1c3   : > { %v493_v61 = vpop.xlane.xlu0 %492 }
 0x1c4   : > { %1521 = vrsqrt.f32 %v500_v60  ;;  %v491_v62 = vpop.xlane.xlu1 %490  ;;  %v498_v63 = vmul.f32 0.00390625, %v493_v61 }
 0x1c5   : > { %v497_v0 = vmul.f32 0.00390625, %v491_v62 }
 0x1c6   : > { %v502_v1 = vadd.f32 1e-05, %v498_v63 }
 0x1c7   : > { %v501_v2 = vadd.f32 1e-05, %v497_v0  ;;  %v495_v3 = vpop.xlane.xlu0 %494 }
 0x1c8   : > { %1523 = vrsqrt.f32 %v502_v1  ;;  %v499_v4 = vmul.f32 0.00390625, %v495_v3 }
 0x1c9   : > { %1525 = vrsqrt.f32 %v501_v2 }
 0x1ca   : > { %v503_v5 = vadd.f32 1e-05, %v499_v4 }
 0x1cc   : > { %1527 = vrsqrt.f32 %v503_v5 }
 0x1ce   : > { %v1522_v6 = vpop.eup %1521 }
 0x1cf   : > { %509 = vst.msk [vmem:[#allocation5] sm:$0xff] %vm508_vm1, %v1522_v6 }
 0x1d2   : > { %v1524_v7 = vpop.eup %1523 }
 0x1d3   : > { %v1526_v8 = vpop.eup %1525  ;;  %511 = vst.msk [vmem:[#allocation5 + $0x10] sm:$0xff] %vm508_vm1, %v1524_v7 }
 0x1d4   : > { %510 = vst.msk [vmem:[#allocation5 + $0x8] sm:$0xff] %vm508_vm1, %v1526_v8 }
 0x1d6   : > { %v1528_v9 = vpop.eup %1527 }
 0x1d7   : > { %512 = vst.msk [vmem:[#allocation5 + $0x18] sm:$0xff] %vm508_vm1, %v1528_v9 }
 0x1d8 PF: > { %p1172_p6 = scmp.ne.s32.totalorder %s1575_s15, 2 }
 0x1d9   : > { %v551_v10 = vld [vmem:[%s1940_s1] sm:$0xff] (!%p1172_p6)  ;;  %v552_v11 = vld [vmem:[%s1940_s1 + $0x8] sm:$0xff] (!%p1172_p6)  ;;  %vm607_vm2 = vcmask (!%p1172_p6), 261120   ;;  %v553_v16 = vld [vmem:[%s1940_s1 + $0x10] sm:$0xff] (!%p1172_p6)  ;;  %v1587_v17 = vmov (!%p1172_p6), 0  }
 0x1da   : > { %516 = sbr.rel (%p1172_p6) target bundleno = 771 (0x303), region = 64  ;;  %v1197_v12 = vld [vmem:[%s1940_s1 + $0x80] sm:$0xff] (!%p1172_p6)  ;;  %v1381_v13 = vpack.c.bf16 (!%p1172_p6), %v552_v11, %v551_v10  ;;  %vm1676_vm3 = vmpackc.low (!%p1172_p6), %vm607_vm2, %vm607_vm2  ;;  %v1198_v15 = vld [vmem:[%s1940_s1 + $0x88] sm:$0xff] (!%p1172_p6)  ;;  %1530 = vset.pattern.permute.xlu1 (!%p1172_p6), %v1587_v17  ;;  %1529 = vset.pattern.permute.xlu0 (!%p1172_p6), %v1587_v17 }
 0x1db   : > { %v1429_v18 = vpack.c.bf16 (!%p1172_p6), %v1198_v15, %v1197_v12  ;;  %v554_v19 = vld [vmem:[%s1940_s1 + $0x18] sm:$0xff] (!%p1172_p6)  ;;  %v1199_v20 = vld [vmem:[%s1940_s1 + $0x90] sm:$0xff] (!%p1172_p6)  ;;  %v555_v24 = vld [vmem:[%s1940_s1 + $0x20] sm:$0xff] (!%p1172_p6) }
 0x1dc   : > { %v1200_v21 = vld [vmem:[%s1940_s1 + $0x98] sm:$0xff] (!%p1172_p6)  ;;  %1383 = vmatprep.subr.msk.bf16.mxu0 (!%p1172_p6), %vm1676_vm3, %v1381_v13  ;;  %v1387_v22 = vpack.c.bf16 (!%p1172_p6), %v554_v19, %v553_v16  ;;  %v556_v25 = vld [vmem:[%s1940_s1 + $0x28] sm:$0xff] (!%p1172_p6)  ;;  %v1201_v26 = vld [vmem:[%s1940_s1 + $0xa0] sm:$0xff] (!%p1172_p6) }
 0x1dd   : > { %v1435_v23 = vpack.c.bf16 (!%p1172_p6), %v1200_v21, %v1199_v20  ;;  %1431 = vmatprep.subr.msk.bf16.mxu1 (!%p1172_p6), %vm1676_vm3, %v1429_v18  ;;  %1386 = vmatpush3.bf16.xpose.msk.msra.mxu0 (!%p1172_p6), %vm1676_vm3, %v1381_v13  ;;  %v1202_v27 = vld [vmem:[%s1940_s1 + $0xa8] sm:$0xff] (!%p1172_p6)  ;;  %v1393_v28 = vpack.c.bf16 (!%p1172_p6), %v556_v25, %v555_v24  ;;  %v517_v30 = vld [vmem:[%s1941_s2] sm:$0xff] (!%p1172_p6)  ;;  %v545_v31 = vld [vmem:[#allocation4 + $0x10] sm:$0xff] (!%p1172_p6) }
 0x1de   : > { %1434 = vmatpush3.bf16.xpose.msk.msra.mxu1 (!%p1172_p6), %vm1676_vm3, %v1429_v18  ;;  %1389 = vmatprep.subr.msk.bf16.mxu0 (!%p1172_p6), %vm1676_vm3, %v1387_v22  ;;  %v1441_v29 = vpack.c.bf16 (!%p1172_p6), %v1202_v27, %v1201_v26  ;;  %v557_v32 = vld [vmem:[%s1940_s1 + $0x30] sm:$0xff] (!%p1172_p6)  ;;  %v558_v33 = vld [vmem:[%s1940_s1 + $0x38] sm:$0xff] (!%p1172_p6)  ;;  %v543_v34 = vld [vmem:[#allocation4] sm:$0xff] (!%p1172_p6) }
 0x1df   : > { %1437 = vmatprep.subr.msk.bf16.mxu1 (!%p1172_p6), %vm1676_vm3, %v1435_v23  ;;  %1325 = vmatprep.mubr.msk.f32.mxu0 (!%p1172_p6), %vm607_vm2, %v517_v30  ;;  %v1203_v35 = vld [vmem:[%s1940_s1 + $0xb0] sm:$0xff] (!%p1172_p6)  ;;  %v1204_v36 = vld [vmem:[%s1940_s1 + $0xb8] sm:$0xff] (!%p1172_p6)  ;;  %v544_v38 = vld [vmem:[#allocation4 + $0x8] sm:$0xff] (!%p1172_p6)  ;;  %v1399_v39 = vpack.c.bf16 (!%p1172_p6), %v558_v33, %v557_v32 }
 0x1e0   : > { %1369 = vmatprep.mubr.msk.f32.mxu1 (!%p1172_p6), %vm607_vm2, %v517_v30  ;;  %797 = vperm.xlu1 (!%p1172_p6), %1530, %v545_v31   ;;  %v546_v37 = vld [vmem:[#allocation4 + $0x18] sm:$0xff] (!%p1172_p6)  ;;  %v1447_v40 = vpack.c.bf16 (!%p1172_p6), %v1204_v36, %v1203_v35  ;;  %v526_v41 = vld [vmem:[%s1942_s3 + $0x8] sm:$0xff] (!%p1172_p6)  ;;  %v525_v42 = vld [vmem:[%s1942_s3] sm:$0xff] (!%p1172_p6) }
 0x1e1   : > { %787 = vperm.xlu0 %1529, %v543_v34   ;;  %v559_v43 = vld [vmem:[%s1940_s1 + $0x40] sm:$0xff]  ;;  %v560_v44 = vld [vmem:[%s1940_s1 + $0x48] sm:$0xff]  ;;  %v528_v47 = vld [vmem:[%s1942_s3 + $0x18] sm:$0xff] }
 0x1e2   : > { %v1205_v45 = vld [vmem:[%s1940_s1 + $0xc0] sm:$0xff]  ;;  %v1206_v46 = vld [vmem:[%s1940_s1 + $0xc8] sm:$0xff]  ;;  %v527_v48 = vld [vmem:[%s1942_s3 + $0x10] sm:$0xff]  ;;  %v1405_v49 = vpack.c.bf16 %v560_v44, %v559_v43 }
 0x1e3   : > { %v1453_v50 = vpack.c.bf16 %v1206_v46, %v1205_v45  ;;  %v548_v51 = vld [vmem:[#allocation5 + $0x8] sm:$0xff]  ;;  %v547_v52 = vld [vmem:[#allocation5] sm:$0xff]  ;;  %v561_v53 = vld [vmem:[%s1940_s1 + $0x50] sm:$0xff] }
 0x1e4   : > { %802 = vperm.xlu1 %1530, %v546_v37   ;;  %v562_v54 = vld [vmem:[%s1940_s1 + $0x58] sm:$0xff]  ;;  %v1207_v55 = vld [vmem:[%s1940_s1 + $0xd0] sm:$0xff]  ;;  %v530_v61 = vld [vmem:[%s1942_s3 + $0x28] sm:$0xff] }
 0x1e5   : > { %1392 = vmatpush3.bf16.xpose.msk.msra.mxu0 %vm1676_vm3, %v1387_v22  ;;  %792 = vperm.xlu0 %1529, %v544_v38   ;;  %v1208_v56 = vld [vmem:[%s1940_s1 + $0xd8] sm:$0xff]  ;;  %v549_v58 = vld [vmem:[#allocation5 + $0x10] sm:$0xff]  ;;  %v1411_v59 = vpack.c.bf16 %v562_v54, %v561_v53  ;;  %v529_v62 = vld [vmem:[%s1942_s3 + $0x20] sm:$0xff] }
 0x1e6   : > { %1440 = vmatpush3.bf16.xpose.msk.msra.mxu1 %vm1676_vm3, %v1435_v23  ;;  %1395 = vmatprep.subr.msk.bf16.mxu0 %vm1676_vm3, %v1393_v28  ;;  %v550_v57 = vld [vmem:[#allocation5 + $0x18] sm:$0xff]  ;;  %v1459_v60 = vpack.c.bf16 %v1208_v56, %v1207_v55  ;;  %v563_v63 = vld [vmem:[%s1940_s1 + $0x60] sm:$0xff]  ;;  %v564_v0 = vld [vmem:[%s1940_s1 + $0x68] sm:$0xff] }
 0x1e7   : > { %1443 = vmatprep.subr.msk.bf16.mxu1 %vm1676_vm3, %v1441_v29  ;;  %v1209_v1 = vld [vmem:[%s1940_s1 + $0xe0] sm:$0xff]  ;;  %v1210_v2 = vld [vmem:[%s1940_s1 + $0xe8] sm:$0xff]  ;;  %v532_v3 = vld [vmem:[%s1942_s3 + $0x38] sm:$0xff]  ;;  %v1417_v5 = vpack.c.bf16 %v564_v0, %v563_v63 }
 0x1e8   : > { %574 = vperm.xlu1 %1530, %v526_v41   ;;  %v531_v4 = vld [vmem:[%s1942_s3 + $0x30] sm:$0xff]  ;;  %v1465_v6 = vpack.c.bf16 %v1210_v2, %v1209_v1  ;;  %v566_v8 = vld [vmem:[%s1940_s1 + $0x78] sm:$0xff]  ;;  %v518_v13 = vld [vmem:[%s1941_s2 + $0x8] sm:$0xff] }
 0x1e9   : > { %569 = vperm.xlu0 %1529, %v525_v42   ;;  %v565_v7 = vld [vmem:[%s1940_s1 + $0x70] sm:$0xff]  ;;  %v1212_v10 = vld [vmem:[%s1940_s1 + $0xf8] sm:$0xff]  ;;  %v521_v14 = vld [vmem:[%s1941_s2 + $0x20] sm:$0xff] }
 0x1ea   : > { %v1211_v9 = vld [vmem:[%s1940_s1 + $0xf0] sm:$0xff]  ;;  %v1423_v11 = vpack.c.bf16 %v566_v8, %v565_v7  ;;  %v520_v16 = vld [vmem:[%s1941_s2 + $0x18] sm:$0xff]  ;;  %v522_v17 = vld [vmem:[%s1941_s2 + $0x28] sm:$0xff] }
 0x1eb   : > { %v1471_v12 = vpack.c.bf16 %v1212_v10, %v1211_v9  ;;  %v519_v15 = vld [vmem:[%s1941_s2 + $0x10] sm:$0xff]  ;;  %v524_v19 = vld [vmem:[%s1941_s2 + $0x38] sm:$0xff]  ;;  %v536_v31 = vld [vmem:[#allocation2 + $0x8] sm:$0xff] }
 0x1ec   : > { %584 = vperm.xlu1 %1530, %v528_v47   ;;  %v523_v18 = vld [vmem:[%s1941_s2 + $0x30] sm:$0xff]  ;;  %v535_v32 = vld [vmem:[#allocation2] sm:$0xff]  ;;  %v540_v33 = vld [vmem:[#allocation2 + $0x28] sm:$0xff] }
 0x1ed   : > { %1398 = vmatpush3.bf16.xpose.msk.msra.mxu0 %vm1676_vm3, %v1393_v28  ;;  %579 = vperm.xlu0 %1529, %v527_v48   ;;  %v539_v36 = vld [vmem:[#allocation2 + $0x20] sm:$0xff]  ;;  %v538_v37 = vld [vmem:[#allocation2 + $0x18] sm:$0xff]  ;;  %v537_v42 = vld [vmem:[#allocation2 + $0x10] sm:$0xff] }
 0x1ee   : > { %1446 = vmatpush3.bf16.xpose.msk.msra.mxu1 %vm1676_vm3, %v1441_v29  ;;  %1401 = vmatprep.subr.msk.bf16.mxu0 %vm1676_vm3, %v1399_v39  ;;  %v541_v45 = vld [vmem:[#allocation2 + $0x30] sm:$0xff] }
 0x1ef   : > { %1449 = vmatprep.subr.msk.bf16.mxu1 %vm1676_vm3, %v1447_v40 }
 0x1f0   : > { %816 = vperm.xlu1 %1530, %v548_v51   ;;  %v542_v51 = vld [vmem:[#allocation2 + $0x38] sm:$0xff] }
 0x1f1   : > { %811 = vperm.xlu0 %1529, %v547_v52  }
 0x1f4   : > { %826 = vperm.xlu1 %1530, %v550_v57  }
 0x1f5   : > { %1404 = vmatpush3.bf16.xpose.msk.msra.mxu0 %vm1676_vm3, %v1399_v39  ;;  %821 = vperm.xlu0 %1529, %v549_v58  }
 0x1f6   : > { %1452 = vmatpush3.bf16.xpose.msk.msra.mxu1 %vm1676_vm3, %v1447_v40  ;;  %1407 = vmatprep.subr.msk.bf16.mxu0 %vm1676_vm3, %v1405_v49 }
 0x1f7   : > { %1455 = vmatprep.subr.msk.bf16.mxu1 %vm1676_vm3, %v1453_v50 }
 0x1f8   : > { %594 = vperm.xlu1 %1530, %v530_v61  }
 0x1f9   : > { %589 = vperm.xlu0 %1529, %v529_v62  }
 0x1fc   : > { %604 = vperm.xlu1 %1530, %v532_v3  }
 0x1fd   : > { %1410 = vmatpush3.bf16.xpose.msk.msra.mxu0 %vm1676_vm3, %v1405_v49  ;;  %599 = vperm.xlu0 %1529, %v531_v4  }
 0x1fe   : > { %1458 = vmatpush3.bf16.xpose.msk.msra.mxu1 %vm1676_vm3, %v1453_v50  ;;  %1413 = vmatprep.subr.msk.bf16.mxu0 %vm1676_vm3, %v1411_v59 }
 0x1ff   : > { %1461 = vmatprep.subr.msk.bf16.mxu1 %vm1676_vm3, %v1459_v60 }
 0x205   : > { %1416 = vmatpush3.bf16.xpose.msk.msra.mxu0 %vm1676_vm3, %v1411_v59 }
 0x206   : > { %1464 = vmatpush3.bf16.xpose.msk.msra.mxu1 %vm1676_vm3, %v1459_v60  ;;  %1419 = vmatprep.subr.msk.bf16.mxu0 %vm1676_vm3, %v1417_v5 }
 0x207   : > { %1467 = vmatprep.subr.msk.bf16.mxu1 %vm1676_vm3, %v1465_v6 }
 0x20d   : > { %1422 = vmatpush3.bf16.xpose.msk.msra.mxu0 %vm1676_vm3, %v1417_v5 }
 0x20e   : > { %1470 = vmatpush3.bf16.xpose.msk.msra.mxu1 %vm1676_vm3, %v1465_v6  ;;  %1425 = vmatprep.subr.msk.bf16.mxu0 %vm1676_vm3, %v1423_v11 }
 0x20f   : > { %1473 = vmatprep.subr.msk.bf16.mxu1 %vm1676_vm3, %v1471_v12 }
 0x215   : > { %1428 = vmatpush3.bf16.xpose.msk.msra.mxu0 %vm1676_vm3, %v1423_v11 }
 0x216   : > { %1476 = vmatpush3.bf16.xpose.msk.msra.mxu1 %vm1676_vm3, %v1471_v12 }
 0x21c   : > { %1326 = vmatmul.mubr.msk.f32.vlgmr.msra.gmra.mrb[0].mxu0 %vm607_vm2, %v518_v13 }
 0x21d   : > { %1370 = vmatmul.mubr.msk.f32.vlgmr.msra.gmra.mrb[0].mxu1 %vm607_vm2, %v518_v13  ;;  %1328 = vmatprep.mubr.msk.f32.mxu0 %vm607_vm2, %v519_v15 }
 0x21e   : > { %1372 = vmatprep.mubr.msk.f32.mxu1 %vm607_vm2, %v519_v15 }
 0x220   : > { %1329 = vmatmul.mubr.msk.f32.gmra.mrb[2].mxu0 %vm607_vm2, %v520_v16 }
 0x221   : > { %1373 = vmatmul.mubr.msk.f32.gmra.mrb[2].mxu1 %vm607_vm2, %v520_v16  ;;  %1331 = vmatprep.mubr.msk.f32.mxu0 %vm607_vm2, %v521_v14 }
 0x222   : > { %1375 = vmatprep.mubr.msk.f32.mxu1 %vm607_vm2, %v521_v14 }
 0x224   : > { %1332 = vmatmul.mubr.msk.f32.gmra.mrb[4].mxu0 %vm607_vm2, %v522_v17 }
 0x225   : > { %1376 = vmatmul.mubr.msk.f32.gmra.mrb[4].mxu1 %vm607_vm2, %v522_v17  ;;  %1334 = vmatprep.mubr.msk.f32.mxu0 %vm607_vm2, %v523_v18 }
 0x226   : > { %1378 = vmatprep.mubr.msk.f32.mxu1 %vm607_vm2, %v523_v18 }
 0x228   : > { %1335 = vmatmul.mubr.msk.f32.gmra.mrb[6].mxu0 %vm607_vm2, %v524_v19 }
 0x229   : > { %1379 = vmatmul.mubr.msk.f32.gmra.mrb[6].mxu1 %vm607_vm2, %v524_v19 }
 0x25f   : > { %v1895_v20 = vpop.permute.xlu1 %797 }
 0x260   : > { %v788_v21 = vpop.permute.xlu0 %787  ;;  %v807_v56 = vsub.f32 %v537_v42, %v1895_v20  ;;  %v1017_v60 = vsub.f32 %v541_v45, %v1895_v20 }
 0x261   : > { %v805_v43 = vsub.f32 %v535_v32, %v788_v21  ;;  %v1015_v46 = vsub.f32 %v539_v36, %v788_v21 }
 0x263   : > { %v1897_v22 = vpop.permute.xlu1 %802 }
 0x264   : > { %v793_v23 = vpop.permute.xlu0 %792  ;;  %v808_v47 = vsub.f32 %v538_v37, %v1897_v22  ;;  %v1018_v0 = vsub.f32 %v542_v51, %v1897_v22 }
 0x265   : > { %v806_v40 = vsub.f32 %v536_v31, %v793_v23  ;;  %v1016_v44 = vsub.f32 %v540_v33, %v793_v23 }
 0x267   : > { %v575_v24 = vpop.permute.xlu1 %574 }
 0x268   : > { %v570_v25 = vpop.permute.xlu0 %569 }
 0x26b   : > { %v585_v26 = vpop.permute.xlu1 %584 }
 0x26c   : > { %v580_v27 = vpop.permute.xlu0 %579 }
 0x26f   : > { %v817_v28 = vpop.permute.xlu1 %816 }
 0x270   : > { %v812_v29 = vpop.permute.xlu0 %811  ;;  %v830_v57 = vmul.f32 %v817_v28, %v806_v40  ;;  %v1020_v61 = vmul.f32 %v1016_v44, %v817_v28 }
 0x271   : > { %v829_v62 = vmul.f32 %v812_v29, %v805_v43  ;;  %v1019_v1 = vmul.f32 %v1015_v46, %v812_v29 }
 0x273   : > { %v827_v30 = vpop.permute.xlu1 %826 }
 0x274   : > { %v822_v34 = vpop.permute.xlu0 %821  ;;  %v832_v2 = vmul.f32 %v827_v30, %v808_v47  ;;  %v1022_v21 = vmul.f32 %v1018_v0, %v827_v30 }
 0x275   : > { %v831_v22 = vmul.f32 %v822_v34, %v807_v56  ;;  %v1021_v29 = vmul.f32 %v1017_v60, %v822_v34 }
 0x277   : > { %v595_v48 = vpop.permute.xlu1 %594 }
 0x278   : > { %v590_v58 = vpop.permute.xlu0 %589 }
 0x27b   : > { %v605_v14 = vpop.permute.xlu1 %604 }
 0x27c   : > { %v600_v23 = vpop.permute.xlu0 %599 }
 0x2ef   : > { %v1327_v35 = vpop.f32.mrb[0].mxu0 }
 0x2f0   : > { %v1371_v38 = vpop.f32.mrb[0].mxu1  ;;  %v746_v39 = vpop.f32.mrb[1].mxu0  ;;  %v752_v49 = vadd.f32 %v1327_v35, %v575_v24 }
 0x2f1   : > { %v976_v41 = vpop.f32.mrb[1].mxu1  ;;  %v982_v52 = vadd.f32 %v1371_v38, %v575_v24  ;;  %v747_v53 = vadd.f32 %v746_v39, %v570_v25 }
 0x2f2   : > { %v977_v63 = vadd.f32 %v976_v41, %v570_v25  ;;  %v834_v3 = vmul.f32 %v830_v57, %v752_v49 }
 0x2f3   : > { %v1330_v50 = vpop.f32.mrb[2].mxu0  ;;  %v1024_v5 = vmul.f32 %v1020_v61, %v982_v52  ;;  %v833_v6 = vmul.f32 %v829_v62, %v747_v53 }
 0x2f4   : > { %v1374_v54 = vpop.f32.mrb[2].mxu1  ;;  %v756_v55 = vpop.f32.mrb[3].mxu0  ;;  %v762_v7 = vadd.f32 %v1330_v50, %v585_v26  ;;  %v1023_v17 = vmul.f32 %v1019_v1, %v977_v63 }
 0x2f5   : > { %v986_v59 = vpop.f32.mrb[3].mxu1  ;;  %v992_v11 = vadd.f32 %v1374_v54, %v585_v26  ;;  %v757_v12 = vadd.f32 %v756_v55, %v580_v27 }
 0x2f6   : > { %v987_v18 = vadd.f32 %v986_v59, %v580_v27  ;;  %v836_v31 = vmul.f32 %v832_v2, %v762_v7 }
 0x2f7   : > { %v1333_v4 = vpop.f32.mrb[4].mxu0  ;;  %v1026_v36 = vmul.f32 %v1022_v21, %v992_v11  ;;  %v835_v37 = vmul.f32 %v831_v22, %v757_v12 }
 0x2f8   : > { %v772_v8 = vadd.f32 %v1333_v4, %v595_v48  ;;  %v1377_v9 = vpop.f32.mrb[4].mxu1  ;;  %v766_v10 = vpop.f32.mrb[5].mxu0  ;;  %v1025_v30 = vmul.f32 %v1021_v29, %v987_v18 }
 0x2f9   : > { %v1002_v13 = vadd.f32 %v1377_v9, %v595_v48  ;;  %v767_v15 = vadd.f32 %v766_v10, %v590_v58  ;;  %v996_v16 = vpop.f32.mrb[5].mxu1 }
 0x2fa   : > { %v838_v19 = vadd.f32 %v834_v3, %v772_v8  ;;  %v997_v20 = vadd.f32 %v996_v16, %v590_v58 }
 0x2fb   : > { %v1028_v24 = vadd.f32 %v1024_v5, %v1002_v13  ;;  %v837_v25 = vadd.f32 %v833_v6, %v767_v15  ;;  %v1336_v28 = vpop.f32.mrb[6].mxu0 }
 0x2fc   : > { %842 = vst [vmem:[#allocation6 + $0x8] sm:$0xff] %v838_v19  ;;  %v1027_v32 = vadd.f32 %v1023_v17, %v997_v20  ;;  %v782_v26 = vadd.f32 %v1336_v28, %v605_v14  ;;  %v1380_v33 = vpop.f32.mrb[6].mxu1  ;;  %v776_v35 = vpop.f32.mrb[7].mxu0 }
 0x2fd   : > { %1238 = vst [vmem:[#allocation6 + $0x28] sm:$0xff] %v1028_v24  ;;  %841 = vst [vmem:[#allocation6] sm:$0xff] %v837_v25  ;;  %v1012_v27 = vadd.f32 %v1380_v33, %v605_v14  ;;  %v777_v38 = vadd.f32 %v776_v35, %v600_v23  ;;  %v1006_v39 = vpop.f32.mrb[7].mxu1 }
 0x2fe   : > { %1237 = vst [vmem:[#allocation6 + $0x20] sm:$0xff] %v1027_v32  ;;  %v840_v40 = vadd.f32 %v836_v31, %v782_v26  ;;  %v1007_v41 = vadd.f32 %v1006_v39, %v600_v23 }
 0x2ff   : > { %v1030_v42 = vadd.f32 %v1026_v36, %v1012_v27  ;;  %v839_v43 = vadd.f32 %v835_v37, %v777_v38 }
 0x300   : > { %844 = vst [vmem:[#allocation6 + $0x18] sm:$0xff] %v840_v40  ;;  %v1029_v34 = vadd.f32 %v1025_v30, %v1007_v41 }
 0x301   : > { %1240 = vst [vmem:[#allocation6 + $0x38] sm:$0xff] %v1030_v42  ;;  %843 = vst [vmem:[#allocation6 + $0x10] sm:$0xff] %v839_v43 }
 0x302   : > { %1239 = vst [vmem:[#allocation6 + $0x30] sm:$0xff] %v1029_v34 }
 0x303 PF: > { %p1905_p7 = scmp.eq.s32.totalorder %s1163_s18, 2  ;;  %s1588_s29 = smov [#allocation6]  }
 0x304   : > { %s1055_s30 = sshll.u32 %s1588_s29, 4  ;;  %s1056_s30 = int_to_ptr.vmem [resolvable:$true] %s1055_s30 }
 0x305   : > { %s1531_s5 = scalar_lea.vmem %s1056_s30, 1024  ;;  %s1537_s6 = scalar_lea.vmem %s1056_s30, 2048 }
 0x306   : > { %p1532_p8 = scmp.ne.s32.totalorder %s1056_s30, %s1531_s5  ;;  %p1538_p11 = scmp.lt.s32.totalorder %s1056_s30, %s1056_s30 }
 0x307   : > { %p1539_p12 = scmp.lt.s32.totalorder %s1537_s6, %s1531_s5 }
 0x308   : > { %p1533_p9 = pnand %p1532_p8, %p1905_p7 }
 0x309   : > { %p1540_p13 = por %p1539_p12, %p1538_p11 }
 0x30a   : > { %p1534_p10 = pneg %p1533_p9 }
 0x30c   : > { %p1541_p0 = pnand %p1540_p13, %p1534_p10 }
 0x30e   : > { %1544 = shalt.err (!%p1541_p0)
}
 0x30f   : > { %s1545_s8 = scalar_lea.hbm %s1943_s4, 1024 }
 0x310   : > { %p1546_p1 = scmp.ne.s32.totalorder %s1943_s4, %s1545_s8  ;;  %p1551_p4 = scmp.lt.u32.totalorder %s1545_s8, %s1943_s4 }
 0x312   : > { %p1547_p2 = pnand %p1546_p1, %p1905_p7 }
 0x314   : > { %p1548_p3 = pneg %p1547_p2 }
 0x316   : > { %p1553_p5 = pnand %p1551_p4, %p1548_p3 }
 0x318   : > { %1556 = shalt.err (!%p1553_p5)
}
 0x319   : > { %s1589_s13 = smov 128   ;;  %s1590_s14 = smov 8  }
 0x31a   : > { %1478 = dma.vmem_to_hbm [thread:$0]  (%p1905_p7), %s1056_s30, 1024, %s1943_s4, [#allocation7], %s1589_s13, %s1589_s13, %s1590_s14  }
 0x31b PF: > { %p1486_p6 = scmp.ge.s32.totalorder %s1583_s17, 2  ;;  %p1487_p8 = scmp.eq.s32.totalorder %s1164_s19, 2 }
 0x31d   : > { %p1482_p9 = pnand %p1487_p8, %p1486_p6 }
 0x31f   : > { %1570 = dma.done.wait (!%p1482_p9), [#allocation7], 1024  }
 0x320   : > { %1572 = vsyncadd (!%p1482_p9), [#allocation7], 4294966272  ;;  %s17_s17 = sadd.s32 1, %s1583_s17   ;;  %s1947_s15 = smov %s1579_s16 }
 0x321   : > { %p14_p10 = scmp.ge.s32.totalorder %s17_s17, 5   ;;  %s1948_s16 = smov %s1950_s20 }
 0x323   :  { %16 = sbr.rel (!%p14_p10) target bundleno = 3 (0x3), region = 107 }
 0x32a   :  { %1076 = vsyncpa [#allocation7], 1 }
 0x32b   :  { %1078 = vsyncpa [#allocation7 + $0x1], 1 }

</bundles_post_ra>
